<compile_context>
chip_gen: v7x
topology: tpu7x:2x2x1
jax: 0.10.0
libtpu: 0.0.40
codegen_flags: <defaults>
</compile_context>

<pallas_src>
import jax
import jax.numpy as jnp
from jax.experimental import pallas as pl
from jax.experimental.pallas import tpu as pltpu


def rnn_encoder_forward(x_tokens, emb_table, w_ih, w_hh, b_ih, b_hh):
    """x_tokens: int32 [T, B].  Returns (output [T, B, H], hidden [1, B, H])."""
    T, B = x_tokens.shape
    V, E = emb_table.shape
    H = w_hh.shape[-1]
    H3 = 3 * H

    # Pad batch to a sublane multiple so per-step slices / stores are tile-aligned.
    B_pad = ((B + 7) // 8) * 8
    BH = B_pad * H

    # ---- wrapper-side weight prep (once, plain-JAX glue) -------------------
    # Fuse gate matrices into one wide matrix, column order [n | r | z]:
    # the n-gate (deepest dependency of the serial recurrence) sits at lane 0.
    w_ih_all = jnp.concatenate([w_ih[2], w_ih[0], w_ih[1]], axis=1)   # (E, 3H)
    w_hh_all = jnp.concatenate([w_hh[2], w_hh[0], w_hh[1]], axis=1)   # (H, 3H)
    # x-path bias carries b_ih for all gates plus b_hh for r,z.
    # b_hh[n] stays separate: it is multiplied by r inside the cell.
    b_x = jnp.concatenate([b_ih[2],
                           b_ih[0] + b_hh[0],
                           b_ih[1] + b_hh[1]], axis=1)                # (1, 3H)
    b_hn = b_hh[2]                                                    # (1, H)

    x_pad = jnp.pad(x_tokens.astype(jnp.int32), ((0, 0), (0, B_pad - B)))
    tok = x_pad.reshape(T * B_pad, 1)                                 # (T*B_pad, 1)

    def kernel(tok_ref, emb_ref, wih_ref, whh_ref, bx_ref, bhn_ref, out_ref):
        # ---- embedding gather fused in as a one-hot MXU matmul ------------
        # Contract: exact for in-range ids; out-of-range / negative ids give a
        # zero embedding row (nn.Embedding would raise).  For large vocabs the
        # table should stay in HBM (memory_space=pl.ANY) with a per-row DMA
        # gather instead; at V=50 x E=16 f32 the whole table fits VMEM easily.
        tok_v = tok_ref[...]                                          # (T*B_pad, 1) i32
        vocab_iota = jax.lax.broadcasted_iota(jnp.int32, (T * B_pad, V), 1)
        onehot = (tok_v == vocab_iota).astype(jnp.float32)            # (T*B_pad, V)
        embedded = jnp.dot(onehot, emb_ref[...],
                           preferred_element_type=jnp.float32)        # (T*B_pad, E)

        # ---- input-path gates for ALL timesteps (not recurrent) -----------
        gx_all = jnp.dot(embedded, wih_ref[...],
                         preferred_element_type=jnp.float32) + bx_ref[...]  # (T*B_pad, 3H)

        whh = whh_ref[...]       # (H, 3H)  -- hoisted loads, loop is unrolled
        bhn = bhn_ref[...]       # (1, H)

        # ---- GRU recurrence: fully unrolled static loop (T=8) --------------
        h = jnp.zeros((B_pad, H), jnp.float32)
        hs = []
        for t in range(T):                       # T is a static Python int
            gx = gx_all[t * B_pad:(t + 1) * B_pad, :]                   # sublane-aligned
            gh = jnp.dot(h, whh, preferred_element_type=jnp.float32)    # (B_pad, 3H)
            rz = jax.nn.sigmoid(gx[:, H:] + gh[:, H:])                  # (B_pad, 2H) [r|z]
            r = rz[:, :H]
            z = rz[:, H:]
            n = jnp.tanh(gx[:, :H] + r * (gh[:, :H] + bhn))             # (B_pad, H)
            h = (1.0 - z) * n + z * h
            hs.append(h)

        # Single lane-dense store: (T, B_pad*H), B_pad*H a multiple of 128.
        out_ref[...] = jnp.stack(hs, axis=0).reshape(T, BH).astype(out_ref.dtype)

    out2d = pl.pallas_call(
        kernel,
        out_shape=jax.ShapeDtypeStruct((T, BH), jnp.float32),
        in_specs=[pl.BlockSpec(memory_space=pltpu.MemorySpace.VMEM)] * 6,
        out_specs=pl.BlockSpec(memory_space=pltpu.MemorySpace.VMEM),
        compiler_params=pltpu.CompilerParams(
            # Explicit, generation-portable VMEM budget (<= defaults on
            # v6e/v7x, raises v5e's 16 MiB scoped default); actual footprint
            # here is well under 1 MiB.
            vmem_limit_bytes=32 * 1024 * 1024),
    )(tok, emb_table, w_ih_all, w_hh_all, b_x, b_hn)

    output = out2d.reshape(T, B_pad, H)[:, :B, :]     # drop batch padding
    hidden = output[-1:, :, :]                        # final hidden == last step
    return output, hidden


def gru_reference(embedded, w_ih, w_hh, b_ih, b_hh):
    """Pure-JAX reference (same math as torch.nn.GRU, single layer, h0=0)."""
    B = embedded.shape[1]
    H = w_hh.shape[-1]
    h0 = jnp.zeros((B, H), jnp.float32)

    def step(h, x):
        i_r = x @ w_ih[0] + b_ih[0]
        i_z = x @ w_ih[1] + b_ih[1]
        i_n = x @ w_ih[2] + b_ih[2]
        h_r = h @ w_hh[0] + b_hh[0]
        h_z = h @ w_hh[1] + b_hh[1]
        h_n = h @ w_hh[2] + b_hh[2]
        r = jax.nn.sigmoid(i_r + h_r)
        z = jax.nn.sigmoid(i_z + h_z)
        n = jnp.tanh(i_n + r * h_n)
        h_new = (1.0 - z) * n + z * h
        return h_new, h_new

    h_last, outs = jax.lax.scan(step, h0, embedded)
    return outs, h_last[None]


if __name__ == "__main__":
    # Small shapes consistent with the module's forward.
    T, B = 8, 4                 # max_len, batch_size
    vocab_size = 50
    embedding_dim = 16
    hidden_units = 32

    key = jax.random.PRNGKey(0)
    k_emb, k_wih, k_whh, k_bih, k_bhh, k_x = jax.random.split(key, 6)

    # "Pretrained" embedding + GRU params (torch gate order r,z,n), stored
    # already transposed for right-multiplication: (3, in, H).
    emb_table = jax.random.normal(k_emb, (vocab_size, embedding_dim), jnp.float32) * 0.1
    w_ih = jax.random.normal(k_wih, (3, embedding_dim, hidden_units), jnp.float32) * 0.1
    w_hh = jax.random.normal(k_whh, (3, hidden_units, hidden_units), jnp.float32) * 0.1
    b_ih = jax.random.normal(k_bih, (3, 1, hidden_units), jnp.float32) * 0.1
    b_hh = jax.random.normal(k_bhh, (3, 1, hidden_units), jnp.float32) * 0.1

    x_tokens = jax.random.randint(k_x, (T, B), 0, vocab_size, dtype=jnp.int32)

    output, hidden = rnn_encoder_forward(x_tokens, emb_table, w_ih, w_hh, b_ih, b_hh)
    jax.block_until_ready((output, hidden))

    assert output.shape == (T, B, hidden_units)
    assert hidden.shape == (1, B, hidden_units)

    # Correctness check against pure-JAX GRU reference.
    embedded = jnp.take(emb_table, x_tokens, axis=0)
    ref_out, ref_hidden = gru_reference(embedded, w_ih, w_hh, b_ih, b_hh)
    assert jnp.allclose(output, ref_out, atol=1e-4), "output mismatch"
    assert jnp.allclose(hidden, ref_hidden, atol=1e-4), "hidden mismatch"

    print("KERNEL_OK")
</pallas_src>

<mosaic_0001>
module attributes {stable_mosaic.version = 11 : i64} {
  func.func @kernel(%arg0: memref<64x1xi32, #tpu.memory_space<vmem>>, %arg1: memref<50x16xf32, #tpu.memory_space<vmem>>, %arg2: memref<16x96xf32, #tpu.memory_space<vmem>>, %arg3: memref<32x96xf32, #tpu.memory_space<vmem>>, %arg4: memref<1x96xf32, #tpu.memory_space<vmem>>, %arg5: memref<1x32xf32, #tpu.memory_space<vmem>>, %arg6: memref<8x256xf32, #tpu.memory_space<vmem>>) attributes {dimension_semantics = [], scalar_prefetch = 0 : i64, scratch_operands = 0 : i64, tpu.core_type = #tpu.core_type<tc>} {
    %c0 = arith.constant 0 : index
    %c0_0 = arith.constant 0 : index
    %0 = vector.load %arg0[%c0, %c0_0] : memref<64x1xi32, #tpu.memory_space<vmem>>, vector<64x1xi32>
    %1 = tpu.iota {dimensions = array<i32: 1>} : vector<64x50xi32>
    %2 = vector.broadcast %0 : vector<64x1xi32> to vector<64x50xi32>
    %3 = arith.cmpi eq, %2, %1 : vector<64x50xi32>
    %4 = arith.extui %3 : vector<64x50xi1> to vector<64x50xi32>
    %5 = arith.sitofp %4 : vector<64x50xi32> to vector<64x50xf32>
    %c0_1 = arith.constant 0 : index
    %c0_2 = arith.constant 0 : index
    %6 = vector.load %arg1[%c0_1, %c0_2] : memref<50x16xf32, #tpu.memory_space<vmem>>, vector<50x16xf32>
    %cst = arith.constant dense<0.000000e+00> : vector<64x16xf32>
    %7 = tpu.matmul %5, %6, %cst {dimension_numbers = #tpu.dot_dimension_numbers<[1], [0], [0], [1], [0, 0, 1, 1], [], []>} : vector<64x50xf32>, vector<50x16xf32>, vector<64x16xf32> -> vector<64x16xf32>
    %c0_3 = arith.constant 0 : index
    %c0_4 = arith.constant 0 : index
    %8 = vector.load %arg2[%c0_3, %c0_4] : memref<16x96xf32, #tpu.memory_space<vmem>>, vector<16x96xf32>
    %cst_5 = arith.constant dense<0.000000e+00> : vector<64x96xf32>
    %9 = tpu.matmul %7, %8, %cst_5 {dimension_numbers = #tpu.dot_dimension_numbers<[1], [0], [0], [1], [0, 0, 1, 1], [], []>} : vector<64x16xf32>, vector<16x96xf32>, vector<64x96xf32> -> vector<64x96xf32>
    %c0_6 = arith.constant 0 : index
    %c0_7 = arith.constant 0 : index
    %10 = vector.load %arg4[%c0_6, %c0_7] : memref<1x96xf32, #tpu.memory_space<vmem>>, vector<1x96xf32>
    %11 = vector.broadcast %10 : vector<1x96xf32> to vector<64x96xf32>
    %12 = arith.addf %9, %11 : vector<64x96xf32>
    %c0_8 = arith.constant 0 : index
    %c0_9 = arith.constant 0 : index
    %13 = vector.load %arg3[%c0_8, %c0_9] : memref<32x96xf32, #tpu.memory_space<vmem>>, vector<32x96xf32>
    %c0_10 = arith.constant 0 : index
    %c0_11 = arith.constant 0 : index
    %14 = vector.load %arg5[%c0_10, %c0_11] : memref<1x32xf32, #tpu.memory_space<vmem>>, vector<1x32xf32>
    %cst_12 = arith.constant 0.000000e+00 : f32
    %15 = vector.broadcast %cst_12 : f32 to vector<8x32xf32>
    %16 = vector.extract_strided_slice %12 {offsets = [0, 0], sizes = [8, 96], strides = [1, 1]} : vector<64x96xf32> to vector<8x96xf32>
    %cst_13 = arith.constant dense<0.000000e+00> : vector<8x96xf32>
    %17 = tpu.matmul %15, %13, %cst_13 {dimension_numbers = #tpu.dot_dimension_numbers<[1], [0], [0], [1], [0, 0, 1, 1], [], []>} : vector<8x32xf32>, vector<32x96xf32>, vector<8x96xf32> -> vector<8x96xf32>
    %18 = vector.extract_strided_slice %16 {offsets = [0, 32], sizes = [8, 64], strides = [1, 1]} : vector<8x96xf32> to vector<8x64xf32>
    %19 = vector.extract_strided_slice %17 {offsets = [0, 32], sizes = [8, 64], strides = [1, 1]} : vector<8x96xf32> to vector<8x64xf32>
    %20 = arith.addf %18, %19 : vector<8x64xf32>
    %21 = arith.negf %20 : vector<8x64xf32>
    %22 = math.exp %21 : vector<8x64xf32>
    %cst_14 = arith.constant 1.000000e+00 : f32
    %23 = vector.broadcast %cst_14 : f32 to vector<8x64xf32>
    %24 = arith.addf %23, %22 : vector<8x64xf32>
    %25 = arith.divf %23, %24 : vector<8x64xf32>
    %26 = vector.extract_strided_slice %25 {offsets = [0, 0], sizes = [8, 32], strides = [1, 1]} : vector<8x64xf32> to vector<8x32xf32>
    %27 = vector.extract_strided_slice %25 {offsets = [0, 32], sizes = [8, 32], strides = [1, 1]} : vector<8x64xf32> to vector<8x32xf32>
    %28 = vector.extract_strided_slice %16 {offsets = [0, 0], sizes = [8, 32], strides = [1, 1]} : vector<8x96xf32> to vector<8x32xf32>
    %29 = vector.extract_strided_slice %17 {offsets = [0, 0], sizes = [8, 32], strides = [1, 1]} : vector<8x96xf32> to vector<8x32xf32>
    %30 = vector.broadcast %14 : vector<1x32xf32> to vector<8x32xf32>
    %31 = arith.addf %29, %30 : vector<8x32xf32>
    %32 = arith.mulf %26, %31 : vector<8x32xf32>
    %33 = arith.addf %28, %32 : vector<8x32xf32>
    %34 = math.tanh %33 : vector<8x32xf32>
    %cst_15 = arith.constant 1.000000e+00 : f32
    %35 = vector.broadcast %cst_15 : f32 to vector<8x32xf32>
    %36 = arith.subf %35, %27 : vector<8x32xf32>
    %37 = arith.mulf %36, %34 : vector<8x32xf32>
    %38 = arith.mulf %27, %15 : vector<8x32xf32>
    %39 = arith.addf %37, %38 : vector<8x32xf32>
    %40 = vector.extract_strided_slice %12 {offsets = [8, 0], sizes = [8, 96], strides = [1, 1]} : vector<64x96xf32> to vector<8x96xf32>
    %cst_16 = arith.constant dense<0.000000e+00> : vector<8x96xf32>
    %41 = tpu.matmul %39, %13, %cst_16 {dimension_numbers = #tpu.dot_dimension_numbers<[1], [0], [0], [1], [0, 0, 1, 1], [], []>} : vector<8x32xf32>, vector<32x96xf32>, vector<8x96xf32> -> vector<8x96xf32>
    %42 = vector.extract_strided_slice %40 {offsets = [0, 32], sizes = [8, 64], strides = [1, 1]} : vector<8x96xf32> to vector<8x64xf32>
    %43 = vector.extract_strided_slice %41 {offsets = [0, 32], sizes = [8, 64], strides = [1, 1]} : vector<8x96xf32> to vector<8x64xf32>
    %44 = arith.addf %42, %43 : vector<8x64xf32>
    %45 = arith.negf %44 : vector<8x64xf32>
    %46 = math.exp %45 : vector<8x64xf32>
    %cst_17 = arith.constant 1.000000e+00 : f32
    %47 = vector.broadcast %cst_17 : f32 to vector<8x64xf32>
    %48 = arith.addf %47, %46 : vector<8x64xf32>
    %49 = arith.divf %47, %48 : vector<8x64xf32>
    %50 = vector.extract_strided_slice %49 {offsets = [0, 0], sizes = [8, 32], strides = [1, 1]} : vector<8x64xf32> to vector<8x32xf32>
    %51 = vector.extract_strided_slice %49 {offsets = [0, 32], sizes = [8, 32], strides = [1, 1]} : vector<8x64xf32> to vector<8x32xf32>
    %52 = vector.extract_strided_slice %40 {offsets = [0, 0], sizes = [8, 32], strides = [1, 1]} : vector<8x96xf32> to vector<8x32xf32>
    %53 = vector.extract_strided_slice %41 {offsets = [0, 0], sizes = [8, 32], strides = [1, 1]} : vector<8x96xf32> to vector<8x32xf32>
    %54 = vector.broadcast %14 : vector<1x32xf32> to vector<8x32xf32>
    %55 = arith.addf %53, %54 : vector<8x32xf32>
    %56 = arith.mulf %50, %55 : vector<8x32xf32>
    %57 = arith.addf %52, %56 : vector<8x32xf32>
    %58 = math.tanh %57 : vector<8x32xf32>
    %cst_18 = arith.constant 1.000000e+00 : f32
    %59 = vector.broadcast %cst_18 : f32 to vector<8x32xf32>
    %60 = arith.subf %59, %51 : vector<8x32xf32>
    %61 = arith.mulf %60, %58 : vector<8x32xf32>
    %62 = arith.mulf %51, %39 : vector<8x32xf32>
    %63 = arith.addf %61, %62 : vector<8x32xf32>
    %64 = vector.extract_strided_slice %12 {offsets = [16, 0], sizes = [8, 96], strides = [1, 1]} : vector<64x96xf32> to vector<8x96xf32>
    %cst_19 = arith.constant dense<0.000000e+00> : vector<8x96xf32>
    %65 = tpu.matmul %63, %13, %cst_19 {dimension_numbers = #tpu.dot_dimension_numbers<[1], [0], [0], [1], [0, 0, 1, 1], [], []>} : vector<8x32xf32>, vector<32x96xf32>, vector<8x96xf32> -> vector<8x96xf32>
    %66 = vector.extract_strided_slice %64 {offsets = [0, 32], sizes = [8, 64], strides = [1, 1]} : vector<8x96xf32> to vector<8x64xf32>
    %67 = vector.extract_strided_slice %65 {offsets = [0, 32], sizes = [8, 64], strides = [1, 1]} : vector<8x96xf32> to vector<8x64xf32>
    %68 = arith.addf %66, %67 : vector<8x64xf32>
    %69 = arith.negf %68 : vector<8x64xf32>
    %70 = math.exp %69 : vector<8x64xf32>
    %cst_20 = arith.constant 1.000000e+00 : f32
    %71 = vector.broadcast %cst_20 : f32 to vector<8x64xf32>
    %72 = arith.addf %71, %70 : vector<8x64xf32>
    %73 = arith.divf %71, %72 : vector<8x64xf32>
    %74 = vector.extract_strided_slice %73 {offsets = [0, 0], sizes = [8, 32], strides = [1, 1]} : vector<8x64xf32> to vector<8x32xf32>
    %75 = vector.extract_strided_slice %73 {offsets = [0, 32], sizes = [8, 32], strides = [1, 1]} : vector<8x64xf32> to vector<8x32xf32>
    %76 = vector.extract_strided_slice %64 {offsets = [0, 0], sizes = [8, 32], strides = [1, 1]} : vector<8x96xf32> to vector<8x32xf32>
    %77 = vector.extract_strided_slice %65 {offsets = [0, 0], sizes = [8, 32], strides = [1, 1]} : vector<8x96xf32> to vector<8x32xf32>
    %78 = vector.broadcast %14 : vector<1x32xf32> to vector<8x32xf32>
    %79 = arith.addf %77, %78 : vector<8x32xf32>
    %80 = arith.mulf %74, %79 : vector<8x32xf32>
    %81 = arith.addf %76, %80 : vector<8x32xf32>
    %82 = math.tanh %81 : vector<8x32xf32>
    %cst_21 = arith.constant 1.000000e+00 : f32
    %83 = vector.broadcast %cst_21 : f32 to vector<8x32xf32>
    %84 = arith.subf %83, %75 : vector<8x32xf32>
    %85 = arith.mulf %84, %82 : vector<8x32xf32>
    %86 = arith.mulf %75, %63 : vector<8x32xf32>
    %87 = arith.addf %85, %86 : vector<8x32xf32>
    %88 = vector.extract_strided_slice %12 {offsets = [24, 0], sizes = [8, 96], strides = [1, 1]} : vector<64x96xf32> to vector<8x96xf32>
    %cst_22 = arith.constant dense<0.000000e+00> : vector<8x96xf32>
    %89 = tpu.matmul %87, %13, %cst_22 {dimension_numbers = #tpu.dot_dimension_numbers<[1], [0], [0], [1], [0, 0, 1, 1], [], []>} : vector<8x32xf32>, vector<32x96xf32>, vector<8x96xf32> -> vector<8x96xf32>
    %90 = vector.extract_strided_slice %88 {offsets = [0, 32], sizes = [8, 64], strides = [1, 1]} : vector<8x96xf32> to vector<8x64xf32>
    %91 = vector.extract_strided_slice %89 {offsets = [0, 32], sizes = [8, 64], strides = [1, 1]} : vector<8x96xf32> to vector<8x64xf32>
    %92 = arith.addf %90, %91 : vector<8x64xf32>
    %93 = arith.negf %92 : vector<8x64xf32>
    %94 = math.exp %93 : vector<8x64xf32>
    %cst_23 = arith.constant 1.000000e+00 : f32
    %95 = vector.broadcast %cst_23 : f32 to vector<8x64xf32>
    %96 = arith.addf %95, %94 : vector<8x64xf32>
    %97 = arith.divf %95, %96 : vector<8x64xf32>
    %98 = vector.extract_strided_slice %97 {offsets = [0, 0], sizes = [8, 32], strides = [1, 1]} : vector<8x64xf32> to vector<8x32xf32>
    %99 = vector.extract_strided_slice %97 {offsets = [0, 32], sizes = [8, 32], strides = [1, 1]} : vector<8x64xf32> to vector<8x32xf32>
    %100 = vector.extract_strided_slice %88 {offsets = [0, 0], sizes = [8, 32], strides = [1, 1]} : vector<8x96xf32> to vector<8x32xf32>
    %101 = vector.extract_strided_slice %89 {offsets = [0, 0], sizes = [8, 32], strides = [1, 1]} : vector<8x96xf32> to vector<8x32xf32>
    %102 = vector.broadcast %14 : vector<1x32xf32> to vector<8x32xf32>
    %103 = arith.addf %101, %102 : vector<8x32xf32>
    %104 = arith.mulf %98, %103 : vector<8x32xf32>
    %105 = arith.addf %100, %104 : vector<8x32xf32>
    %106 = math.tanh %105 : vector<8x32xf32>
    %cst_24 = arith.constant 1.000000e+00 : f32
    %107 = vector.broadcast %cst_24 : f32 to vector<8x32xf32>
    %108 = arith.subf %107, %99 : vector<8x32xf32>
    %109 = arith.mulf %108, %106 : vector<8x32xf32>
    %110 = arith.mulf %99, %87 : vector<8x32xf32>
    %111 = arith.addf %109, %110 : vector<8x32xf32>
    %112 = vector.extract_strided_slice %12 {offsets = [32, 0], sizes = [8, 96], strides = [1, 1]} : vector<64x96xf32> to vector<8x96xf32>
    %cst_25 = arith.constant dense<0.000000e+00> : vector<8x96xf32>
    %113 = tpu.matmul %111, %13, %cst_25 {dimension_numbers = #tpu.dot_dimension_numbers<[1], [0], [0], [1], [0, 0, 1, 1], [], []>} : vector<8x32xf32>, vector<32x96xf32>, vector<8x96xf32> -> vector<8x96xf32>
    %114 = vector.extract_strided_slice %112 {offsets = [0, 32], sizes = [8, 64], strides = [1, 1]} : vector<8x96xf32> to vector<8x64xf32>
    %115 = vector.extract_strided_slice %113 {offsets = [0, 32], sizes = [8, 64], strides = [1, 1]} : vector<8x96xf32> to vector<8x64xf32>
    %116 = arith.addf %114, %115 : vector<8x64xf32>
    %117 = arith.negf %116 : vector<8x64xf32>
    %118 = math.exp %117 : vector<8x64xf32>
    %cst_26 = arith.constant 1.000000e+00 : f32
    %119 = vector.broadcast %cst_26 : f32 to vector<8x64xf32>
    %120 = arith.addf %119, %118 : vector<8x64xf32>
    %121 = arith.divf %119, %120 : vector<8x64xf32>
    %122 = vector.extract_strided_slice %121 {offsets = [0, 0], sizes = [8, 32], strides = [1, 1]} : vector<8x64xf32> to vector<8x32xf32>
    %123 = vector.extract_strided_slice %121 {offsets = [0, 32], sizes = [8, 32], strides = [1, 1]} : vector<8x64xf32> to vector<8x32xf32>
    %124 = vector.extract_strided_slice %112 {offsets = [0, 0], sizes = [8, 32], strides = [1, 1]} : vector<8x96xf32> to vector<8x32xf32>
    %125 = vector.extract_strided_slice %113 {offsets = [0, 0], sizes = [8, 32], strides = [1, 1]} : vector<8x96xf32> to vector<8x32xf32>
    %126 = vector.broadcast %14 : vector<1x32xf32> to vector<8x32xf32>
    %127 = arith.addf %125, %126 : vector<8x32xf32>
    %128 = arith.mulf %122, %127 : vector<8x32xf32>
    %129 = arith.addf %124, %128 : vector<8x32xf32>
    %130 = math.tanh %129 : vector<8x32xf32>
    %cst_27 = arith.constant 1.000000e+00 : f32
    %131 = vector.broadcast %cst_27 : f32 to vector<8x32xf32>
    %132 = arith.subf %131, %123 : vector<8x32xf32>
    %133 = arith.mulf %132, %130 : vector<8x32xf32>
    %134 = arith.mulf %123, %111 : vector<8x32xf32>
    %135 = arith.addf %133, %134 : vector<8x32xf32>
    %136 = vector.extract_strided_slice %12 {offsets = [40, 0], sizes = [8, 96], strides = [1, 1]} : vector<64x96xf32> to vector<8x96xf32>
    %cst_28 = arith.constant dense<0.000000e+00> : vector<8x96xf32>
    %137 = tpu.matmul %135, %13, %cst_28 {dimension_numbers = #tpu.dot_dimension_numbers<[1], [0], [0], [1], [0, 0, 1, 1], [], []>} : vector<8x32xf32>, vector<32x96xf32>, vector<8x96xf32> -> vector<8x96xf32>
    %138 = vector.extract_strided_slice %136 {offsets = [0, 32], sizes = [8, 64], strides = [1, 1]} : vector<8x96xf32> to vector<8x64xf32>
    %139 = vector.extract_strided_slice %137 {offsets = [0, 32], sizes = [8, 64], strides = [1, 1]} : vector<8x96xf32> to vector<8x64xf32>
    %140 = arith.addf %138, %139 : vector<8x64xf32>
    %141 = arith.negf %140 : vector<8x64xf32>
    %142 = math.exp %141 : vector<8x64xf32>
    %cst_29 = arith.constant 1.000000e+00 : f32
    %143 = vector.broadcast %cst_29 : f32 to vector<8x64xf32>
    %144 = arith.addf %143, %142 : vector<8x64xf32>
    %145 = arith.divf %143, %144 : vector<8x64xf32>
    %146 = vector.extract_strided_slice %145 {offsets = [0, 0], sizes = [8, 32], strides = [1, 1]} : vector<8x64xf32> to vector<8x32xf32>
    %147 = vector.extract_strided_slice %145 {offsets = [0, 32], sizes = [8, 32], strides = [1, 1]} : vector<8x64xf32> to vector<8x32xf32>
    %148 = vector.extract_strided_slice %136 {offsets = [0, 0], sizes = [8, 32], strides = [1, 1]} : vector<8x96xf32> to vector<8x32xf32>
    %149 = vector.extract_strided_slice %137 {offsets = [0, 0], sizes = [8, 32], strides = [1, 1]} : vector<8x96xf32> to vector<8x32xf32>
    %150 = vector.broadcast %14 : vector<1x32xf32> to vector<8x32xf32>
    %151 = arith.addf %149, %150 : vector<8x32xf32>
    %152 = arith.mulf %146, %151 : vector<8x32xf32>
    %153 = arith.addf %148, %152 : vector<8x32xf32>
    %154 = math.tanh %153 : vector<8x32xf32>
    %cst_30 = arith.constant 1.000000e+00 : f32
    %155 = vector.broadcast %cst_30 : f32 to vector<8x32xf32>
    %156 = arith.subf %155, %147 : vector<8x32xf32>
    %157 = arith.mulf %156, %154 : vector<8x32xf32>
    %158 = arith.mulf %147, %135 : vector<8x32xf32>
    %159 = arith.addf %157, %158 : vector<8x32xf32>
    %160 = vector.extract_strided_slice %12 {offsets = [48, 0], sizes = [8, 96], strides = [1, 1]} : vector<64x96xf32> to vector<8x96xf32>
    %cst_31 = arith.constant dense<0.000000e+00> : vector<8x96xf32>
    %161 = tpu.matmul %159, %13, %cst_31 {dimension_numbers = #tpu.dot_dimension_numbers<[1], [0], [0], [1], [0, 0, 1, 1], [], []>} : vector<8x32xf32>, vector<32x96xf32>, vector<8x96xf32> -> vector<8x96xf32>
    %162 = vector.extract_strided_slice %160 {offsets = [0, 32], sizes = [8, 64], strides = [1, 1]} : vector<8x96xf32> to vector<8x64xf32>
    %163 = vector.extract_strided_slice %161 {offsets = [0, 32], sizes = [8, 64], strides = [1, 1]} : vector<8x96xf32> to vector<8x64xf32>
    %164 = arith.addf %162, %163 : vector<8x64xf32>
    %165 = arith.negf %164 : vector<8x64xf32>
    %166 = math.exp %165 : vector<8x64xf32>
    %cst_32 = arith.constant 1.000000e+00 : f32
    %167 = vector.broadcast %cst_32 : f32 to vector<8x64xf32>
    %168 = arith.addf %167, %166 : vector<8x64xf32>
    %169 = arith.divf %167, %168 : vector<8x64xf32>
    %170 = vector.extract_strided_slice %169 {offsets = [0, 0], sizes = [8, 32], strides = [1, 1]} : vector<8x64xf32> to vector<8x32xf32>
    %171 = vector.extract_strided_slice %169 {offsets = [0, 32], sizes = [8, 32], strides = [1, 1]} : vector<8x64xf32> to vector<8x32xf32>
    %172 = vector.extract_strided_slice %160 {offsets = [0, 0], sizes = [8, 32], strides = [1, 1]} : vector<8x96xf32> to vector<8x32xf32>
    %173 = vector.extract_strided_slice %161 {offsets = [0, 0], sizes = [8, 32], strides = [1, 1]} : vector<8x96xf32> to vector<8x32xf32>
    %174 = vector.broadcast %14 : vector<1x32xf32> to vector<8x32xf32>
    %175 = arith.addf %173, %174 : vector<8x32xf32>
    %176 = arith.mulf %170, %175 : vector<8x32xf32>
    %177 = arith.addf %172, %176 : vector<8x32xf32>
    %178 = math.tanh %177 : vector<8x32xf32>
    %cst_33 = arith.constant 1.000000e+00 : f32
    %179 = vector.broadcast %cst_33 : f32 to vector<8x32xf32>
    %180 = arith.subf %179, %171 : vector<8x32xf32>
    %181 = arith.mulf %180, %178 : vector<8x32xf32>
    %182 = arith.mulf %171, %159 : vector<8x32xf32>
    %183 = arith.addf %181, %182 : vector<8x32xf32>
    %184 = vector.extract_strided_slice %12 {offsets = [56, 0], sizes = [8, 96], strides = [1, 1]} : vector<64x96xf32> to vector<8x96xf32>
    %cst_34 = arith.constant dense<0.000000e+00> : vector<8x96xf32>
    %185 = tpu.matmul %183, %13, %cst_34 {dimension_numbers = #tpu.dot_dimension_numbers<[1], [0], [0], [1], [0, 0, 1, 1], [], []>} : vector<8x32xf32>, vector<32x96xf32>, vector<8x96xf32> -> vector<8x96xf32>
    %186 = vector.extract_strided_slice %184 {offsets = [0, 32], sizes = [8, 64], strides = [1, 1]} : vector<8x96xf32> to vector<8x64xf32>
    %187 = vector.extract_strided_slice %185 {offsets = [0, 32], sizes = [8, 64], strides = [1, 1]} : vector<8x96xf32> to vector<8x64xf32>
    %188 = arith.addf %186, %187 : vector<8x64xf32>
    %189 = arith.negf %188 : vector<8x64xf32>
    %190 = math.exp %189 : vector<8x64xf32>
    %cst_35 = arith.constant 1.000000e+00 : f32
    %191 = vector.broadcast %cst_35 : f32 to vector<8x64xf32>
    %192 = arith.addf %191, %190 : vector<8x64xf32>
    %193 = arith.divf %191, %192 : vector<8x64xf32>
    %194 = vector.extract_strided_slice %193 {offsets = [0, 0], sizes = [8, 32], strides = [1, 1]} : vector<8x64xf32> to vector<8x32xf32>
    %195 = vector.extract_strided_slice %193 {offsets = [0, 32], sizes = [8, 32], strides = [1, 1]} : vector<8x64xf32> to vector<8x32xf32>
    %196 = vector.extract_strided_slice %184 {offsets = [0, 0], sizes = [8, 32], strides = [1, 1]} : vector<8x96xf32> to vector<8x32xf32>
    %197 = vector.extract_strided_slice %185 {offsets = [0, 0], sizes = [8, 32], strides = [1, 1]} : vector<8x96xf32> to vector<8x32xf32>
    %198 = vector.broadcast %14 : vector<1x32xf32> to vector<8x32xf32>
    %199 = arith.addf %197, %198 : vector<8x32xf32>
    %200 = arith.mulf %194, %199 : vector<8x32xf32>
    %201 = arith.addf %196, %200 : vector<8x32xf32>
    %202 = math.tanh %201 : vector<8x32xf32>
    %cst_36 = arith.constant 1.000000e+00 : f32
    %203 = vector.broadcast %cst_36 : f32 to vector<8x32xf32>
    %204 = arith.subf %203, %195 : vector<8x32xf32>
    %205 = arith.mulf %204, %202 : vector<8x32xf32>
    %206 = arith.mulf %195, %183 : vector<8x32xf32>
    %207 = arith.addf %205, %206 : vector<8x32xf32>
    %208 = vector.shape_cast %39 : vector<8x32xf32> to vector<1x8x32xf32>
    %209 = vector.shape_cast %63 : vector<8x32xf32> to vector<1x8x32xf32>
    %210 = vector.shape_cast %87 : vector<8x32xf32> to vector<1x8x32xf32>
    %211 = vector.shape_cast %111 : vector<8x32xf32> to vector<1x8x32xf32>
    %212 = vector.shape_cast %135 : vector<8x32xf32> to vector<1x8x32xf32>
    %213 = vector.shape_cast %159 : vector<8x32xf32> to vector<1x8x32xf32>
    %214 = vector.shape_cast %183 : vector<8x32xf32> to vector<1x8x32xf32>
    %215 = vector.shape_cast %207 : vector<8x32xf32> to vector<1x8x32xf32>
    %216 = tpu.concatenate %208, %209, %210, %211, %212, %213, %214, %215 in 0 : vector<1x8x32xf32>, vector<1x8x32xf32>, vector<1x8x32xf32>, vector<1x8x32xf32>, vector<1x8x32xf32>, vector<1x8x32xf32>, vector<1x8x32xf32>, vector<1x8x32xf32> -> vector<8x8x32xf32>
    %217 = vector.shape_cast %216 : vector<8x8x32xf32> to vector<8x256xf32>
    %c0_37 = arith.constant 0 : index
    %c0_38 = arith.constant 0 : index
    %218 = vector.load %arg6[%c0_37, %c0_38] : memref<8x256xf32, #tpu.memory_space<vmem>>, vector<8x256xf32>
    tpu.vector_store %arg6[%c0_37, %c0_38], %217 {strides = array<i32>} : memref<8x256xf32, #tpu.memory_space<vmem>>, vector<8x256xf32>,
    return
  }
}

</mosaic_0001>

<bundles_post_ra>
// kernel: tpu_custom_call.1
= control target key start
LH: loop header
LB: loop body
LE: loop exit
PB: predicated region body
PF: predicated region fallthrough
CT: control target
= control target key end

     0   :  { %v1768_v2 = vmov 0   ;;  %s2088_s0 = inlined_call_operand.vmem [shape: s32[64,1], index: 0, kind: input, shape index: {}]   ;;  %s2089_s1 = inlined_call_operand.vmem [shape: f32[50,16], index: 1, kind: input, shape index: {}]   ;;  %s2090_s2 = inlined_call_operand.vmem [shape: f32[16,96], index: 2, kind: input, shape index: {}]   ;;  %s2091_s3 = inlined_call_operand.vmem [shape: f32[32,96], index: 3, kind: input, shape index: {}]   ;;  %s2092_s4 = inlined_call_operand.vmem [shape: f32[1,96], index: 4, kind: input, shape index: {}]   ;;  %s2093_s5 = inlined_call_operand.vmem [shape: f32[1,32], index: 5, kind: input, shape index: {}]   ;;  %s2094_s6 = inlined_call_operand.hbm [shape: f32[8,256], index: 6, kind: output, shape index: {}]  }
   0x1   :  { %v26_v0 = vld [vmem:[%s2088_s0 + $0x10] sm:$0xff]  ;;  %v24_v1 = vld [vmem:[%s2088_s0] sm:$0xff]  ;;  %1695 = vset.pattern.permute.xlu1 %v1768_v2  ;;  %1694 = vset.pattern.permute.xlu0 %v1768_v2  ;;  %v27_v3 = vld [vmem:[%s2088_s0 + $0x18] sm:$0xff] }
   0x2   :  { %41 = vperm.xlu1 %1695, %v26_v0   ;;  %35 = vperm.xlu0 %1694, %v24_v1   ;;  %v25_v4 = vld [vmem:[%s2088_s0 + $0x8] sm:$0xff]  ;;  %v82_v5 = vld [vmem:[%s2089_s1] sm:$0xff]  ;;  %v84_v7 = vld [vmem:[%s2089_s1 + $0x10] sm:$0xff] }
   0x3   :  { %v83_v6 = vld [vmem:[%s2089_s1 + $0x8] sm:$0xff]  ;;  %v85_v8 = vld [vmem:[%s2089_s1 + $0x18] sm:$0xff] }
   0x4   :  { %v1620_v9 = vpack.c.bf16 %v83_v6, %v82_v5 }
   0x5   :  { %11 = vsyncpa [#allocation3], 0  ;;  %v1624_v10 = vpack.c.bf16 %v85_v8, %v84_v7  ;;  %v86_v11 = vld [vmem:[%s2089_s1 + $0x20] sm:$0xff]  ;;  %v87_v12 = vld [vmem:[%s2089_s1 + $0x28] sm:$0xff]  ;;  %vm114_vm0 = vcmask 1041408   ;;  %v32_v22 = vlaneseq  ;;  %vm89_vm1 = vcmask 408576  }
   0x6   :  { %44 = vperm.xlu1 %1695, %v27_v3   ;;  %38 = vperm.xlu0 %1694, %v25_v4   ;;  %v29_v13 = vld [vmem:[%s2088_s0 + $0x28] sm:$0xff]  ;;  %v28_v14 = vld [vmem:[%s2088_s0 + $0x20] sm:$0xff]  ;;  %v1628_v15 = vpack.c.bf16 %v87_v12, %v86_v11  ;;  %v31_v16 = vld [vmem:[%s2088_s0 + $0x38] sm:$0xff]  ;;  %v1769_v26 = vmov 0.0   ;;  %v1770_v41 = vmov 0.0|0.0   ;;  %vm1771_vm10 = vmmov 0  }
   0x7   :  { %1621 = vmatprep.subr.bf16.mxu0 %v1620_v9  ;;  %v30_v17 = vld [vmem:[%s2088_s0 + $0x30] sm:$0xff]  ;;  %v223_v19 = vld [vmem:[%s2090_s2] sm:$0xff]  ;;  %v224_v20 = vld [vmem:[%s2090_s2 + $0x8] sm:$0xff]  ;;  %v33_v23 = vand.u32 127, %v32_v22  ;;  %vm232_vm11 = vcmask 130048   ;;  %s1772_s14 = smov 32  }
   0x8   :  { %1623 = vmatpush3.bf16.msra.mxu0 %v1620_v9  ;;  %v88_v18 = vld [vmem:[%s2089_s1 + $0x30] sm:$0x3]  ;;  %v1632_v21 = vpack.c.bf16 %v224_v20, %v223_v19  ;;  %v362_v42 = vld [vmem:[%s2091_s3] sm:$0xff]  ;;  %v363_v43 = vld [vmem:[%s2091_s3 + $0x8] sm:$0xff]  ;;  %s1773_s15 = smov 96   ;;  %vm367_vm12 = vcmask 261120  }
   0x9   :  { %1625 = vmatprep.subr.bf16.mxu0 %v1624_v10  ;;  %v1889_v44 = vpack.c.bf16 %v363_v43, %v362_v42  ;;  %v364_v45 = vld [vmem:[%s2091_s3 + $0x10] sm:$0xff]  ;;  %v365_v46 = vld [vmem:[%s2091_s3 + $0x18] sm:$0xff]  ;;  %v1400_v56 = vld [vmem:[%s2092_s4] ss:$0 sm:$0xff]  ;;  %vm1360_vm13 = vcmask 523264   ;;  %s1777_s16 = smov [#allocation2]  }
   0xa   :  { %50 = vperm.xlu1 %1695, %v29_v13   ;;  %47 = vperm.xlu0 %1694, %v28_v14   ;;  %v1899_v47 = vpack.c.bf16 %v365_v46, %v364_v45  ;;  %v1946_v8 = vld [vmem:[%s2093_s5] ss:$0 sm:$0xff]  ;;  %s1774_s5 = smov 64   ;;  %s1375_s17 = sshll.u32 %s1777_s16, 4  ;;  %vm1362_vm14 = vcmask 785408   ;;  %s1376_s17 = int_to_ptr.vmem [resolvable:$true] %s1375_s17 }
   0xb   :  { %1633 = vmatprep.subr.bf16.mxu1 %v1632_v21  ;;  %s1744_s18 = scalar_lea.vmem %s1376_s17, 256  ;;  %p1749_p1 = scmp.lt.s32.totalorder %s1376_s17, %s1376_s17 }
   0xc   :  { %1627 = vmatpush3.bf16.msra.mxu0 %v1624_v10  ;;  %1635 = vmatpush3.bf16.msra.mxu1 %v1632_v21  ;;  %p1745_p0 = scmp.ne.s32.totalorder %s1376_s17, %s1744_s18  ;;  %p1750_p2 = scmp.lt.s32.totalorder %s1744_s18, %s1744_s18 }
   0xd   :  { %1629 = vmatprep.subr.bf16.mxu0 %v1628_v15  ;;  %1636 = vmatprep.subr.bf16.mxu1 %v1770_v41 }
   0xe   :  { %56 = vperm.xlu1 %1695, %v31_v16   ;;  %53 = vperm.xlu0 %1694, %v30_v17   ;;  %p1751_p3 = por %p1750_p2, %p1749_p1 }
  0x10   :  { %1631 = vmatpush3.bf16.msra.mxu0 %v1628_v15  ;;  %p1752_p4 = pnand %p1751_p3, %p1745_p0 }
  0x11   :  { %1502 = vmatprep.subr.msk.mxu0 %vm114_vm0, %v88_v18 }
  0x14   :  { %1503 = vmatpush3.msk.msra.mxu0 %vm114_vm0, %v88_v18 }
  0x15   :  { %1648 = vmatprep.subr.bf16.mxu0 %v1770_v41 }
  0x81   :  { %v42_v24 = vpop.permute.xlu1 %41  ;;  %v36_v25 = vpop.permute.xlu0 %35 }
  0x82   :  { %vm58_vm2 = vcmp.eq.s32.totalorder %v36_v25, %v33_v23  ;;  %vm60_vm3 = vcmp.eq.s32.totalorder %v42_v24, %v33_v23 }
  0x83   :  { %v1383_v27 = vsel %vm58_vm2, 1.0, %v1769_v26  ;;  %v1385_v30 = vsel %vm60_vm3, 1.0, %v1769_v26 }
  0x84   :  { %1504 = vmatprep.mubr.msk.f32.mxu0 %vm89_vm1, %v1383_v27 }
  0x85   :  { %v45_v28 = vpop.permute.xlu1 %44  ;;  %v39_v29 = vpop.permute.xlu0 %38 }
  0x86   :  { %vm59_vm4 = vcmp.eq.s32.totalorder %v39_v29, %v33_v23  ;;  %vm61_vm5 = vcmp.eq.s32.totalorder %v45_v28, %v33_v23 }
  0x87   :  { %v1384_v31 = vsel %vm59_vm4, 1.0, %v1769_v26  ;;  %v1386_v34 = vsel %vm61_vm5, 1.0, %v1769_v26 }
  0x88   :  { %1505 = vmatmul.mubr.msk.f32.vlgmr.msra.gmra.mrb[0].mxu0 %vm89_vm1, %v1384_v31 }
  0x89   :  { %v51_v32 = vpop.permute.xlu1 %50  ;;  %1507 = vmatprep.mubr.msk.f32.mxu0 %vm89_vm1, %v1385_v30  ;;  %v48_v33 = vpop.permute.xlu0 %47  ;;  %1650 = vmatpush3.bf16.msra.mxu0 %v1889_v44 }
  0x8a   :  { %vm62_vm6 = vcmp.eq.s32.totalorder %v48_v33, %v33_v23  ;;  %vm63_vm7 = vcmp.eq.s32.totalorder %v51_v32, %v33_v23  ;;  %1651 = vmatprep.subr.bf16.mxu0 %v1770_v41 }
  0x8b   :  { %v1387_v35 = vsel %vm62_vm6, 1.0, %v1769_v26  ;;  %v1388_v38 = vsel %vm63_vm7, 1.0, %v1769_v26 }
  0x8c   :  { %1508 = vmatmul.mubr.msk.f32.gmra.mrb[2].mxu0 %vm89_vm1, %v1386_v34 }
  0x8d   :  { %v57_v36 = vpop.permute.xlu1 %56  ;;  %1510 = vmatprep.mubr.msk.f32.mxu0 %vm89_vm1, %v1387_v35  ;;  %v54_v37 = vpop.permute.xlu0 %53  ;;  %1653 = vmatpush3.bf16.msra.mxu0 %v1899_v47 }
  0x8e   :  { %vm64_vm8 = vcmp.eq.s32.totalorder %v54_v37, %v33_v23  ;;  %vm65_vm9 = vcmp.eq.s32.totalorder %v57_v36, %v33_v23  ;;  %1660 = vmatprep.subr.bf16.mxu0 %v1770_v41 }
  0x8f   :  { %v1389_v39 = vsel %vm64_vm8, 1.0, %v1769_v26  ;;  %v1390_v40 = vsel %vm65_vm9, 1.0, %v1769_v26 }
  0x90   :  { %1511 = vmatmul.mubr.msk.f32.gmra.mrb[4].mxu0 %vm89_vm1, %v1388_v38 }
  0x91   :  { %1513 = vmatprep.mubr.msk.f32.mxu0 %vm89_vm1, %v1389_v39 }
  0x94   :  { %1514 = vmatmul.mubr.msk.f32.gmra.mrb[6].mxu0 %vm89_vm1, %v1390_v40 }
  0x95   :  { %1562 = vmatprep.mubr.msk.f32.mxu0 %vm1771_vm10, %v1769_v26 }
 0x15b   :  { %v1506_v48 = vpop.f32.mrb[0].mxu0 }
 0x15c   :  { %v184_v49 = vpop.f32.mrb[1].mxu0 }
 0x15d   :  { %1520 = vmatprep.mubr.msk.f32.mxu1 %vm232_vm11, %v184_v49 }
 0x15e   :  { %1521 = vmatmul.mubr.msk.f32.vlgmr.msra.gmra.mrb[0].mxu1 %vm232_vm11, %v1506_v48 }
 0x15f   :  { %1638 = vmatpush3.bf16.msra.mxu1 %v1889_v44  ;;  %v1509_v50 = vpop.f32.mrb[2].mxu0 }
 0x160   :  { %v194_v51 = vpop.f32.mrb[3].mxu0  ;;  %1639 = vmatprep.subr.bf16.mxu1 %v1770_v41 }
 0x161   :  { %1523 = vmatprep.mubr.msk.f32.mxu1 %vm232_vm11, %v194_v51 }
 0x162   :  { %1524 = vmatmul.mubr.msk.f32.gmra.mrb[2].mxu1 %vm232_vm11, %v1509_v50 }
 0x163   :  { %v1512_v52 = vpop.f32.mrb[4].mxu0  ;;  %1641 = vmatpush3.bf16.msra.mxu1 %v1899_v47 }
 0x164   :  { %v204_v53 = vpop.f32.mrb[5].mxu0  ;;  %1642 = vmatprep.subr.bf16.mxu1 %v1770_v41 }
 0x165   :  { %1526 = vmatprep.mubr.msk.f32.mxu1 %vm232_vm11, %v204_v53 }
 0x166   :  { %1527 = vmatmul.mubr.msk.f32.gmra.mrb[4].mxu1 %vm232_vm11, %v1512_v52 }
 0x167   :  { %v1515_v54 = vpop.f32.mrb[6].mxu0 }
 0x168   :  { %v214_v55 = vpop.f32.mrb[7].mxu0 }
 0x169   :  { %1529 = vmatprep.mubr.msk.f32.mxu1 %vm232_vm11, %v214_v55 }
 0x16a   :  { %1530 = vmatmul.mubr.msk.f32.gmra.mrb[6].mxu1 %vm232_vm11, %v1515_v54 }
 0x16b   :  { %1540 = vmatprep.mubr.msk.f32.mxu1 %vm1771_vm10, %v1769_v26 }
 0x16e   :  { %1541 = vmatmul.mubr.f32.vlgmr.msra.gmra.mrb[8].mxu1 %v1769_v26 }
 0x16f   :  { %1644 = vmatpush3.bf16.msra.mxu1 %v1889_v44  ;;  %1551 = vmatprep.mubr.msk.f32.mxu1 %vm1771_vm10, %v1769_v26 }
 0x170   :  { %1645 = vmatprep.subr.bf16.mxu1 %v1770_v41 }
 0x173   :  { %1647 = vmatpush3.bf16.msra.mxu1 %v1899_v47 }
 0x174   :  { %1654 = vmatprep.subr.bf16.mxu1 %v1770_v41 }
 0x231   :  { %v1522_v57 = vpop.f32.mrb[0].mxu1 }
 0x232   :  { %v1929_v58 = vadd.f32 %v1522_v57, %v1400_v56  ;;  %v323_v59 = vpop.f32.mrb[1].mxu1 }
 0x233   :  { %v324_v12 = vadd.f32 %v1400_v56, %v323_v59 }
 0x235   :  { %v1525_v60 = vpop.f32.mrb[2].mxu1 }
 0x236   :  { %v1931_v61 = vadd.f32 %v1525_v60, %v1400_v56  ;;  %v333_v62 = vpop.f32.mrb[3].mxu1 }
 0x237   :  { %v1933_v63 = vadd.f32 %v1400_v56, %v333_v62 }
 0x239   :  { %v1528_v0 = vpop.f32.mrb[4].mxu1 }
 0x23a   :  { %v1935_v1 = vadd.f32 %v1528_v0, %v1400_v56  ;;  %v343_v2 = vpop.f32.mrb[5].mxu1 }
 0x23b   :  { %v1937_v3 = vadd.f32 %v1400_v56, %v343_v2 }
 0x23d   :  { %v1531_v4 = vpop.f32.mrb[6].mxu1 }
 0x23e   :  { %v1939_v5 = vadd.f32 %v1531_v4, %v1400_v56  ;;  %v353_v6 = vpop.f32.mrb[7].mxu1 }
 0x23f   :  { %v1941_v7 = vadd.f32 %v1400_v56, %v353_v6 }
 0x241   :  { %v437_v9 = vpop.f32.mrb[8].mxu1 }
 0x242   :  { %v454_v10 = vadd.f32 %v1946_v8, %v437_v9  ;;  %v1542_v11 = vpop.f32.mrb[9].mxu1  ;;  %v441_v13 = vadd.f32 %v437_v9, %v324_v12 }
 0x244   :  { %456 = vrot.lane.b32.xlu0 %v454_v10, %s1772_s14  ;;  %v1409_v14 = vmul.f32 -1.442695, %v441_v13 }
 0x246   :  { %1696 = vpow2.f32 %v1409_v14 }
 0x250   :  { %v1697_v15 = vpop.eup %1696 }
 0x251   :  { %v445_v16 = vadd.f32 1.0, %v1697_v15 }
 0x253   :  { %1698 = vrcp.f32 %v445_v16 }
 0x25d   :  { %v1699_v17 = vpop.eup %1698 }
 0x25e   :  { %v466_v24 = vsub.f32 1.0, %v1699_v17  ;;  %v472_v27 = vmul.f32 0.0, %v1699_v17 }
 0x2b6   :  { %v457_v18 = vpop.permute.xlu0 %456 }
 0x2b7   :  { %v459_v19 = vmul.f32 %v1699_v17, %v457_v18 }
 0x2b9   :  { %461 = vrot.lane.b32.xlu1 %v459_v19, %s1773_s15 }
 0x32b   :  { %v462_v20 = vpop.permute.xlu1 %461 }
 0x32c   :  { %v464_v21 = vadd.f32 %v462_v20, %v324_v12 }
 0x32e   :  { %1700 = vtanh.f32 %v464_v21 }
 0x338   :  { %v1701_v23 = vpop.eup %1700 }
 0x339   :  { %468 = vrot.lane.b32.xlu0 %v1701_v23, %s1774_s5 }
 0x3ab   :  { %v469_v25 = vpop.permute.xlu0 %468 }
 0x3ac   :  { %v471_v28 = vmul.f32 %v469_v25, %v466_v24 }
 0x3ae   :  { %v473_v29 = vadd.f32 %v472_v27, %v471_v28 }
 0x3b0   :  { %475 = vrot.lane.b32.xlu1 %v473_v29, %s1774_s5 }
 0x422   :  { %v1953_v30 = vpop.permute.xlu1 %475 }
 0x423   :  { %1552 = vmatmul.mubr.msk.f32.vlgmr.msra.gmra.mrb[10].mxu1 %vm367_vm12, %v1953_v30 }
 0x424   :  { %1656 = vmatpush3.bf16.msra.mxu1 %v1889_v44  ;;  %1573 = vmatprep.mubr.msk.f32.mxu1 %vm1771_vm10, %v1769_v26 }
 0x425   :  { %1657 = vmatprep.subr.bf16.mxu1 %v1770_v41 }
 0x428   :  { %1659 = vmatpush3.bf16.msra.mxu1 %v1899_v47 }
 0x429   :  { %1666 = vmatprep.subr.bf16.mxu1 %v1770_v41 }
 0x4f6   :  { %v545_v31 = vpop.f32.mrb[10].mxu1 }
 0x4f7   :  { %v556_v32 = vadd.f32 %v1946_v8, %v545_v31  ;;  %v1553_v33 = vpop.f32.mrb[11].mxu1  ;;  %v549_v34 = vadd.f32 %v545_v31, %v1929_v58 }
 0x4f9   :  { %558 = vrot.lane.b32.xlu0 %v556_v32, %s1772_s14  ;;  %v1412_v35 = vmul.f32 -1.442695, %v549_v34 }
 0x4fb   :  { %1702 = vpow2.f32 %v1412_v35 }
 0x505   :  { %v1703_v36 = vpop.eup %1702 }
 0x506   :  { %v553_v37 = vadd.f32 1.0, %v1703_v36 }
 0x508   :  { %1704 = vrcp.f32 %v553_v37 }
 0x512   :  { %v1705_v38 = vpop.eup %1704 }
 0x513   :  { %v568_v46 = vsub.f32 1.0, %v1705_v38  ;;  %v574_v49 = vmul.f32 %v1705_v38, %v473_v29 }
 0x56b   :  { %v559_v39 = vpop.permute.xlu0 %558 }
 0x56c   :  { %v561_v40 = vmul.f32 %v1705_v38, %v559_v39 }
 0x56e   :  { %563 = vrot.lane.b32.xlu1 %v561_v40, %s1773_s15 }
 0x5e0   :  { %v564_v42 = vpop.permute.xlu1 %563 }
 0x5e1   :  { %v566_v43 = vadd.f32 %v564_v42, %v1929_v58 }
 0x5e3   :  { %1706 = vtanh.f32 %v566_v43 }
 0x5ed   :  { %v1707_v45 = vpop.eup %1706 }
 0x5ee   :  { %570 = vrot.lane.b32.xlu0 %v1707_v45, %s1774_s5 }
 0x660   :  { %v571_v48 = vpop.permute.xlu0 %570 }
 0x661   :  { %v573_v50 = vmul.f32 %v571_v48, %v568_v46 }
 0x663   :  { %v575_v51 = vadd.f32 %v574_v49, %v573_v50 }
 0x665   :  { %577 = vrot.lane.b32.xlu1 %v575_v51, %s1774_s5 }
 0x6d7   :  { %v1970_v52 = vpop.permute.xlu1 %577 }
 0x6d8   :  { %1563 = vmatmul.mubr.msk.f32.vlgmr.msra.gmra.mrb[8].mxu0 %vm367_vm12, %v1970_v52 }
 0x6d9   :  { %1662 = vmatpush3.bf16.msra.mxu0 %v1889_v44  ;;  %1584 = vmatprep.mubr.msk.f32.mxu0 %vm1771_vm10, %v1769_v26 }
 0x6da   :  { %1663 = vmatprep.subr.bf16.mxu0 %v1770_v41 }
 0x6dd   :  { %1665 = vmatpush3.bf16.msra.mxu0 %v1899_v47 }
 0x6de   :  { %1672 = vmatprep.subr.bf16.mxu0 %v1770_v41 }
 0x7ab   :  { %v647_v53 = vpop.f32.mrb[8].mxu0 }
 0x7ac   :  { %v658_v54 = vadd.f32 %v1946_v8, %v647_v53  ;;  %v1564_v55 = vpop.f32.mrb[9].mxu0  ;;  %v651_v56 = vadd.f32 %v647_v53, %v1933_v63 }
 0x7ae   :  { %660 = vrot.lane.b32.xlu0 %v658_v54, %s1772_s14  ;;  %v1414_v57 = vmul.f32 -1.442695, %v651_v56 }
 0x7b0   :  { %1708 = vpow2.f32 %v1414_v57 }
 0x7ba   :  { %v1709_v58 = vpop.eup %1708 }
 0x7bb   :  { %v655_v59 = vadd.f32 1.0, %v1709_v58 }
 0x7bd   :  { %1710 = vrcp.f32 %v655_v59 }
 0x7c7   :  { %v1711_v60 = vpop.eup %1710 }
 0x7c8   :  { %v670_v9 = vsub.f32 1.0, %v1711_v60  ;;  %v676_v11 = vmul.f32 %v1711_v60, %v575_v51 }
 0x820   :  { %v661_v62 = vpop.permute.xlu0 %660 }
 0x821   :  { %v663_v0 = vmul.f32 %v1711_v60, %v661_v62 }
 0x823   :  { %665 = vrot.lane.b32.xlu1 %v663_v0, %s1773_s15 }
 0x895   :  { %v666_v2 = vpop.permute.xlu1 %665 }
 0x896   :  { %v668_v4 = vadd.f32 %v666_v2, %v1933_v63 }
 0x898   :  { %1712 = vtanh.f32 %v668_v4 }
 0x8a2   :  { %v1713_v6 = vpop.eup %1712 }
 0x8a3   :  { %672 = vrot.lane.b32.xlu0 %v1713_v6, %s1774_s5 }
 0x915   :  { %v673_v10 = vpop.permute.xlu0 %672 }
 0x916   :  { %v675_v12 = vmul.f32 %v673_v10, %v670_v9 }
 0x918   :  { %v677_v13 = vadd.f32 %v676_v11, %v675_v12 }
 0x91a   :  { %679 = vrot.lane.b32.xlu1 %v677_v13, %s1774_s5 }
 0x98c   :  { %v1987_v14 = vpop.permute.xlu1 %679 }
 0x98d   :  { %1574 = vmatmul.mubr.msk.f32.vlgmr.msra.gmra.mrb[12].mxu1 %vm367_vm12, %v1987_v14 }
 0x98e   :  { %1668 = vmatpush3.bf16.msra.mxu1 %v1889_v44  ;;  %1595 = vmatprep.mubr.msk.f32.mxu1 %vm1771_vm10, %v1769_v26 }
 0x98f   :  { %1669 = vmatprep.subr.bf16.mxu1 %v1770_v41 }
 0x992   :  { %1671 = vmatpush3.bf16.msra.mxu1 %v1899_v47 }
 0x993   :  { %1678 = vmatprep.subr.bf16.mxu1 %v1770_v41 }
 0xa60   :  { %v749_v63 = vpop.f32.mrb[12].mxu1 }
 0xa61   :  { %v760_v15 = vadd.f32 %v1946_v8, %v749_v63  ;;  %v1575_v16 = vpop.f32.mrb[13].mxu1  ;;  %v753_v17 = vadd.f32 %v749_v63, %v1931_v61 }
 0xa63   :  { %762 = vrot.lane.b32.xlu0 %v760_v15, %s1772_s14  ;;  %v1416_v18 = vmul.f32 -1.442695, %v753_v17 }
 0xa65   :  { %1714 = vpow2.f32 %v1416_v18 }
 0xa6f   :  { %v1715_v19 = vpop.eup %1714 }
 0xa70   :  { %v757_v20 = vadd.f32 1.0, %v1715_v19 }
 0xa72   :  { %1716 = vrcp.f32 %v757_v20 }
 0xa7c   :  { %v1717_v21 = vpop.eup %1716 }
 0xa7d   :  { %v772_v29 = vsub.f32 1.0, %v1717_v21  ;;  %v778_v32 = vmul.f32 %v1717_v21, %v677_v13 }
 0xad5   :  { %v763_v23 = vpop.permute.xlu0 %762 }
 0xad6   :  { %v765_v24 = vmul.f32 %v1717_v21, %v763_v23 }
 0xad8   :  { %767 = vrot.lane.b32.xlu1 %v765_v24, %s1773_s15 }
 0xb4a   :  { %v768_v25 = vpop.permute.xlu1 %767 }
 0xb4b   :  { %v770_v27 = vadd.f32 %v768_v25, %v1931_v61 }
 0xb4d   :  { %1718 = vtanh.f32 %v770_v27 }
 0xb57   :  { %v1719_v28 = vpop.eup %1718 }
 0xb58   :  { %774 = vrot.lane.b32.xlu0 %v1719_v28, %s1774_s5 }
 0xbca   :  { %v775_v31 = vpop.permute.xlu0 %774 }
 0xbcb   :  { %v777_v33 = vmul.f32 %v775_v31, %v772_v29 }
 0xbcd   :  { %v779_v34 = vadd.f32 %v778_v32, %v777_v33 }
 0xbcf   :  { %781 = vrot.lane.b32.xlu1 %v779_v34, %s1774_s5 }
 0xc41   :  { %v2004_v35 = vpop.permute.xlu1 %781 }
 0xc42   :  { %1585 = vmatmul.mubr.msk.f32.vlgmr.msra.gmra.mrb[10].mxu0 %vm367_vm12, %v2004_v35 }
 0xc43   :  { %1674 = vmatpush3.bf16.msra.mxu0 %v1889_v44  ;;  %1606 = vmatprep.mubr.msk.f32.mxu0 %vm1771_vm10, %v1769_v26 }
 0xc44   :  { %1675 = vmatprep.subr.bf16.mxu0 %v1770_v41 }
 0xc47   :  { %1677 = vmatpush3.bf16.msra.mxu0 %v1899_v47 }
 0xd15   :  { %v851_v61 = vpop.f32.mrb[10].mxu0 }
 0xd16   :  { %v862_v36 = vadd.f32 %v1946_v8, %v851_v61  ;;  %v1586_v37 = vpop.f32.mrb[11].mxu0  ;;  %v855_v38 = vadd.f32 %v851_v61, %v1937_v3 }
 0xd18   :  { %864 = vrot.lane.b32.xlu0 %v862_v36, %s1772_s14  ;;  %v1418_v39 = vmul.f32 -1.442695, %v855_v38 }
 0xd1a   :  { %1720 = vpow2.f32 %v1418_v39 }
 0xd24   :  { %v1721_v40 = vpop.eup %1720 }
 0xd25   :  { %v859_v42 = vadd.f32 1.0, %v1721_v40 }
 0xd27   :  { %1722 = vrcp.f32 %v859_v42 }
 0xd31   :  { %v1723_v43 = vpop.eup %1722 }
 0xd32   :  { %v874_v51 = vsub.f32 1.0, %v1723_v43  ;;  %v880_v54 = vmul.f32 %v1723_v43, %v779_v34 }
 0xd8a   :  { %v865_v45 = vpop.permute.xlu0 %864 }
 0xd8b   :  { %v867_v46 = vmul.f32 %v1723_v43, %v865_v45 }
 0xd8d   :  { %869 = vrot.lane.b32.xlu1 %v867_v46, %s1773_s15 }
 0xdff   :  { %v870_v48 = vpop.permute.xlu1 %869 }
 0xe00   :  { %v872_v49 = vadd.f32 %v870_v48, %v1937_v3 }
 0xe02   :  { %1724 = vtanh.f32 %v872_v49 }
 0xe0c   :  { %v1725_v50 = vpop.eup %1724 }
 0xe0d   :  { %876 = vrot.lane.b32.xlu0 %v1725_v50, %s1774_s5 }
 0xe7f   :  { %v877_v53 = vpop.permute.xlu0 %876 }
 0xe80   :  { %v879_v55 = vmul.f32 %v877_v53, %v874_v51 }
 0xe82   :  { %v881_v56 = vadd.f32 %v880_v54, %v879_v55 }
 0xe84   :  { %883 = vrot.lane.b32.xlu1 %v881_v56, %s1774_s5 }
 0xef6   :  { %v2020_v57 = vpop.permute.xlu1 %883 }
 0xef7   :  { %1596 = vmatmul.mubr.msk.f32.vlgmr.msra.gmra.mrb[14].mxu1 %vm367_vm12, %v2020_v57 }
 0xef8   :  { %1680 = vmatpush3.bf16.msra.mxu1 %v1889_v44  ;;  %1617 = vmatprep.mubr.msk.f32.mxu1 %vm1771_vm10, %v1769_v26 }
 0xef9   :  { %1681 = vmatprep.subr.bf16.mxu1 %v1770_v41 }
 0xefc   :  { %1683 = vmatpush3.bf16.msra.mxu1 %v1899_v47 }
 0xfca   :  { %v953_v3 = vpop.f32.mrb[14].mxu1 }
 0xfcb   :  { %v964_v58 = vadd.f32 %v1946_v8, %v953_v3  ;;  %v1597_v59 = vpop.f32.mrb[15].mxu1  ;;  %v957_v60 = vadd.f32 %v953_v3, %v1935_v1 }
 0xfcd   :  { %966 = vrot.lane.b32.xlu0 %v964_v58, %s1772_s14  ;;  %v1420_v62 = vmul.f32 -1.442695, %v957_v60  ;;  %v1205_v58 = vshrl.u32 %v32_v22, 7  ;;  %v1215_v60 = vcombine.low %v1970_v52, %v2004_v35 }
 0xfcf   :  { %1726 = vpow2.f32 %v1420_v62  ;;  %v1776_v62 = vmov 1934713408  }
 0xfd9   :  { %v1727_v0 = vpop.eup %1726 }
 0xfda   :  { %v961_v2 = vadd.f32 1.0, %v1727_v0  ;;  %v1266_v0 = vunpack.c.l.s4 %v1776_v62 }
 0xfdc   :  { %1728 = vrcp.f32 %v961_v2 }
 0xfe6   :  { %v1729_v44 = vpop.eup %1728 }
 0xfe7   :  { %v976_v9 = vsub.f32 1.0, %v1729_v44  ;;  %v982_v11 = vmul.f32 %v1729_v44, %v881_v56  ;;  %v1775_v56 = vmov 1983009808  }
 0xfe8   :  { %v1202_v3 = vunpack.c.l.s4 %v1775_v56 }
 0xfea   :  { %v1203_v59 = vunpack.c.0.s8 %v1202_v3 }
 0xfec   :  { %v1206_v2 = vsub.s32 %v1203_v59, %v1205_v58 }
0x103f   :  { %v967_v4 = vpop.permute.xlu0 %966 }
0x1040   :  { %v969_v26 = vmul.f32 %v1729_v44, %v967_v4  ;;  %v1199_v44 = vcombine.low %v1953_v30, %v1987_v14  ;;  %v1200_v4 = vcombine.high %v1953_v30, %v1987_v14 }
0x1042   :  { %971 = vrot.lane.b32.xlu1 %v969_v26, %s1773_s15  ;;  %v1223_v26 = vrot.slane %v1215_v60, %v1206_v2 }
0x10b4   :  { %v972_v41 = vpop.permute.xlu1 %971 }
0x10b5   :  { %v974_v47 = vadd.f32 %v972_v41, %v1935_v1 }
0x10b7   :  { %1730 = vtanh.f32 %v974_v47  ;;  %v1267_v47 = vunpack.c.0.s8 %v1266_v0 }
0x10c1   :  { %v1731_v6 = vpop.eup %1730 }
0x10c2   :  { %978 = vrot.lane.b32.xlu0 %v1731_v6, %s1774_s5 }
0x1134   :  { %v979_v10 = vpop.permute.xlu0 %978 }
0x1135   :  { %v981_v12 = vmul.f32 %v979_v10, %v976_v9  ;;  %v1207_v9 = vrot.slane %v1199_v44, %v1206_v2  ;;  %v1214_v10 = vrot.slane %v1200_v4, %v1206_v2 }
0x1137   :  { %v983_v13 = vadd.f32 %v982_v11, %v981_v12  ;;  %v1263_v12 = vcombine.low %v1207_v9, %v1223_v26 }
0x1139   :  { %985 = vrot.lane.b32.xlu1 %v983_v13, %s1774_s5 }
0x11ab   :  { %v2036_v63 = vpop.permute.xlu1 %985 }
0x11ac   :  { %1607 = vmatmul.mubr.msk.f32.vlgmr.msra.gmra.mrb[12].mxu0 %vm367_vm12, %v2036_v63 }
0x127f   :  { %v1055_v15 = vpop.f32.mrb[12].mxu0 }
0x1280   :  { %v1066_v16 = vadd.f32 %v1946_v8, %v1055_v15  ;;  %v1608_v1 = vpop.f32.mrb[13].mxu0  ;;  %v1059_v17 = vadd.f32 %v1055_v15, %v1941_v7  ;;  %v1270_v15 = vsub.s32 %v1267_v47, %v1205_v58 }
0x1282   :  { %1068 = vrot.lane.b32.xlu0 %v1066_v16, %s1772_s14  ;;  %v1422_v18 = vmul.f32 -1.442695, %v1059_v17 }
0x1284   :  { %1732 = vpow2.f32 %v1422_v18 }
0x128e   :  { %v1733_v19 = vpop.eup %1732 }
0x128f   :  { %v1063_v20 = vadd.f32 1.0, %v1733_v19 }
0x1291   :  { %1734 = vrcp.f32 %v1063_v20 }
0x129b   :  { %v1735_v21 = vpop.eup %1734 }
0x129c   :  { %v1078_v29 = vsub.f32 1.0, %v1735_v21  ;;  %v1084_v32 = vmul.f32 %v1735_v21, %v983_v13 }
0x12f4   :  { %v1069_v23 = vpop.permute.xlu0 %1068 }
0x12f5   :  { %v1071_v24 = vmul.f32 %v1735_v21, %v1069_v23  ;;  %v1264_v21 = vcombine.high %v1207_v9, %v1223_v26 }
0x12f7   :  { %1073 = vrot.lane.b32.xlu1 %v1071_v24, %s1773_s15 }
0x1369   :  { %v1074_v25 = vpop.permute.xlu1 %1073 }
0x136a   :  { %v1076_v27 = vadd.f32 %v1074_v25, %v1941_v7  ;;  %v1271_v25 = vrot.slane %v1263_v12, %v1270_v15 }
0x136c   :  { %1736 = vtanh.f32 %v1076_v27 }
0x1376   :  { %v1737_v28 = vpop.eup %1736 }
0x1377   :  { %1080 = vrot.lane.b32.xlu0 %v1737_v28, %s1774_s5 }
0x13e9   :  { %v1081_v31 = vpop.permute.xlu0 %1080 }
0x13ea   :  { %v1083_v33 = vmul.f32 %v1081_v31, %v1078_v29 }
0x13ec   :  { %v1085_v34 = vadd.f32 %v1084_v32, %v1083_v33 }
0x13ee   :  { %1087 = vrot.lane.b32.xlu1 %v1085_v34, %s1774_s5 }
0x1460   :  { %v1088_v61 = vpop.permute.xlu1 %1087 }
0x1461   :  { %1618 = vmatmul.mubr.msk.f32.vlgmr.msra.gmra.mrb[16].mxu1 %vm367_vm12, %v1088_v61  ;;  %v1231_v22 = vcombine.low %v2020_v57, %v1088_v61  ;;  %v1232_v6 = vcombine.high %v2020_v57, %v1088_v61  ;;  %v1278_v61 = vrot.slane %v1264_v21, %v1270_v15 }
0x1463   :  { %v1239_v16 = vrot.slane %v1231_v22, %v1206_v2  ;;  %v1246_v1 = vrot.slane %v1232_v6, %v1206_v2 }
0x1534   :  { %v1157_v36 = vpop.f32.mrb[16].mxu1 }
0x1535   :  { %v1168_v37 = vadd.f32 %v1946_v8, %v1157_v36  ;;  %v1619_v38 = vpop.f32.mrb[17].mxu1  ;;  %v1161_v7 = vadd.f32 %v1157_v36, %v1939_v5 }
0x1537   :  { %1170 = vrot.lane.b32.xlu0 %v1168_v37, %s1772_s14  ;;  %v1424_v39 = vmul.f32 -1.442695, %v1161_v7 }
0x1539   :  { %1738 = vpow2.f32 %v1424_v39 }
0x1543   :  { %v1739_v40 = vpop.eup %1738 }
0x1544   :  { %v1165_v42 = vadd.f32 1.0, %v1739_v40 }
0x1546   :  { %1740 = vrcp.f32 %v1165_v42 }
0x1550   :  { %v1741_v43 = vpop.eup %1740 }
0x1551   :  { %v1180_v50 = vsub.f32 1.0, %v1741_v43  ;;  %v1186_v53 = vmul.f32 %v1741_v43, %v1085_v34 }
0x15a9   :  { %v1171_v45 = vpop.permute.xlu0 %1170 }
0x15aa   :  { %v1173_v46 = vmul.f32 %v1741_v43, %v1171_v45 }
0x15ac   :  { %1175 = vrot.lane.b32.xlu1 %v1173_v46, %s1773_s15 }
0x161e   :  { %v1176_v48 = vpop.permute.xlu1 %1175 }
0x161f   :  { %v1178_v49 = vadd.f32 %v1176_v48, %v1939_v5  ;;  %v1216_v5 = vcombine.high %v1970_v52, %v2004_v35 }
0x1621   :  { %1742 = vtanh.f32 %v1178_v49  ;;  %v1230_v41 = vrot.slane %v1216_v5, %v1206_v2 }
0x1623   :  { %v1279_v13 = vcombine.low %v1214_v10, %v1230_v41  ;;  %v1280_v57 = vcombine.high %v1214_v10, %v1230_v41 }
0x1625   :  { %v1287_v23 = vrot.slane %v1279_v13, %v1270_v15  ;;  %v1294_v34 = vrot.slane %v1280_v57, %v1270_v15 }
0x162b   :  { %v1743_v8 = vpop.eup %1742 }
0x162c   :  { %1182 = vrot.lane.b32.xlu0 %v1743_v8, %s1774_s5 }
0x169e   :  { %v1183_v51 = vpop.permute.xlu0 %1182 }
0x169f   :  { %v1185_v54 = vmul.f32 %v1183_v51, %v1180_v50 }
0x16a1   :  { %v1187_v55 = vadd.f32 %v1186_v53, %v1185_v54 }
0x16a3   :  { %1189 = vrot.lane.b32.xlu1 %v1187_v55, %s1774_s5 }
0x1715   :  { %v1190_v11 = vpop.permute.xlu1 %1189 }
0x1716   :  { %v1247_v52 = vcombine.low %v2036_v63, %v1190_v11  ;;  %v1248_v35 = vcombine.high %v2036_v63, %v1190_v11 }
0x1718   :  { %v1255_v30 = vrot.slane %v1247_v52, %v1206_v2  ;;  %v1262_v14 = vrot.slane %v1248_v35, %v1206_v2 }
0x171a   :  { %v1295_v17 = vcombine.low %v1239_v16, %v1255_v30  ;;  %v1296_v18 = vcombine.high %v1239_v16, %v1255_v30  ;;  %v1311_v19 = vcombine.low %v1246_v1, %v1262_v14  ;;  %v1312_v20 = vcombine.high %v1246_v1, %v1262_v14 }
0x171c   :  { %v1319_v24 = vrot.slane %v1311_v19, %v1270_v15  ;;  %v1303_v27 = vrot.slane %v1295_v17, %v1270_v15  ;;  %v1326_v63 = vrot.slane %v1312_v20, %v1270_v15  ;;  %v1310_v31 = vrot.slane %v1296_v18, %v1270_v15 }
0x171e   :  { %v1332_v28 = vcombine.high %v1287_v23, %v1319_v24  ;;  %v1328_v29 = vcombine.high %v1271_v25, %v1303_v27  ;;  %v1331_v32 = vcombine.low %v1287_v23, %v1319_v24  ;;  %v1327_v33 = vcombine.low %v1271_v25, %v1303_v27 }
0x171f   :  { %v1333_v36 = vcombine.low %v1294_v34, %v1326_v63  ;;  %v1329_v37 = vcombine.low %v1278_v61, %v1310_v31  ;;  %v1334_v38 = vcombine.high %v1294_v34, %v1326_v63  ;;  %v1330_v7 = vcombine.high %v1278_v61, %v1310_v31 }
0x1720   :  { %1348 = vrot.lane.b32.xlu1 %v1332_v28, %s1772_s14  ;;  %1336 = vrot.lane.b32.xlu0 %v1328_v29, %s1772_s14 }
0x1724   :  { %1352 = vrot.lane.b32.xlu1 %v1333_v36, %s1774_s5  ;;  %1340 = vrot.lane.b32.xlu0 %v1329_v37, %s1774_s5 }
0x1728   :  { %1356 = vrot.lane.b32.xlu1 %v1334_v38, %s1773_s15  ;;  %1344 = vrot.lane.b32.xlu0 %v1330_v7, %s1773_s15 }
0x1792   :  { %v1349_v39 = vpop.permute.xlu1 %1348  ;;  %v1337_v40 = vpop.permute.xlu0 %1336 }
0x1793   :  { %v1364_v45 = vsel %vm367_vm12, %v1331_v32, %v1349_v39  ;;  %v1359_v46 = vsel %vm367_vm12, %v1327_v33, %v1337_v40 }
0x1796   :  { %v1353_v42 = vpop.permute.xlu1 %1352  ;;  %v1341_v43 = vpop.permute.xlu0 %1340 }
0x1797   :  { %v1365_v48 = vsel %vm1360_vm13, %v1364_v45, %v1353_v42  ;;  %v1361_v49 = vsel %vm1360_vm13, %v1359_v46, %v1341_v43 }
0x179a   :  { %v1357_v8 = vpop.permute.xlu1 %1356  ;;  %v1345_v50 = vpop.permute.xlu0 %1344 }
0x179b   :  { %v1366_v51 = vsel %vm1362_vm14, %v1365_v48, %v1357_v8  ;;  %v1363_v53 = vsel %vm1362_vm14, %v1361_v49, %v1345_v50 }
0x179c   :  { %1368 = vst [vmem:[#allocation2 + $0x8] sm:$0xff] %v1366_v51  ;;  %1367 = vst [vmem:[#allocation2] sm:$0xff] %v1363_v53 }
0x179d   :  { %1755 = shalt.err (!%p1752_p4)
}
0x179e   :  { %s1756_s21 = scalar_lea.hbm %s2094_s6, 256 }
0x179f   :  { %p1757_p5 = scmp.ne.s32.totalorder %s2094_s6, %s1756_s21  ;;  %p1760_p6 = scmp.lt.u32.totalorder %s1756_s21, %s2094_s6 }
0x17a1   :  { %p1762_p7 = pnand %p1760_p6, %p1757_p5 }
0x17a3   :  { %1765 = shalt.err (!%p1762_p7)
}
0x17a4   :  { %1378 = dma.vmem_to_hbm [thread:$0]  %s1376_s17, 256, %s2094_s6, [#allocation3]  }
0x17a5   :  { %1766 = dma.done.wait [#allocation3], 256  }
0x17a6   :  { %1767 = vsyncadd [#allocation3], 4294967040 }
0x17a7   :  { %1382 = vsyncpa [#allocation3], 1 }

</bundles_post_ra>
